<compile_context>
chip_gen: v7x
topology: tpu7x:2x2x1
jax: 0.10.0
libtpu: 0.0.40
codegen_flags: <defaults>
</compile_context>

<pallas_src>
import functools

import jax
import jax.numpy as jnp
from jax.experimental import pallas as pl
from jax.experimental.pallas import tpu as pltpu


def embedding_kernel(patch_ref, w_ref, b_ref, cls_ref, pos0_ref, posp_ref, out_ref):
    """One batch tile (TB images) per grid step.

    patch_ref: (TB, N, K) bf16  flattened patches (K = C*P*P)
    w_ref:     (K, D)     bf16  patch projection weight (Conv2d weight reshaped)
    b_ref:     (1, D)     f32   projection bias
    cls_ref:   (1, D)     f32   class token
    pos0_ref:  (1, D)     f32   positional embedding row 0 (class position)
    posp_ref:  (N, D)     f32   positional embedding rows 1..N (patch positions)
    out_ref:   (TB, S, D) f32   embedded tokens, S = N + 1
    """
    TB, N, K = patch_ref.shape
    D = w_ref.shape[1]

    patches = patch_ref[...].reshape(TB * N, K)                      # bf16 MXU operand
    proj = jnp.dot(patches, w_ref[...],
                   preferred_element_type=jnp.float32)               # (TB*N, D), f32 acc
    proj = proj.reshape(TB, N, D) + b_ref[...] + posp_ref[...]       # bias + pos in f32

    cls_row = (cls_ref[...] + pos0_ref[...]).reshape(1, 1, D)
    out_ref[:, 0:1, :] = jnp.broadcast_to(cls_row, (TB, 1, D))       # class token rows
    out_ref[:, 1:, :] = proj                                         # patch token rows


def _pick_batch_tile(B, N, K, S, D, budget_bytes=8 * 1024 * 1024):
    """Largest divisor of B whose double-buffered streaming footprint fits the budget."""
    per_img = 2 * (N * K * 2) + 2 * (S * D * 4)   # bf16 patches in + f32 tokens out, x2 buffers
    tb = 1
    for cand in range(1, B + 1):
        if B % cand == 0 and cand * per_img <= budget_bytes:
            tb = cand
    return tb


def embedding_block_forward(x, params, *, patch_size):
    """x: (B, C, H, W) f32  ->  (B, N+1, D) f32."""
    B, C, H, W = x.shape
    P = patch_size
    nH, nW = H // P, W // P
    N = nH * nW
    S = N + 1
    K = C * P * P
    D = params["patch_w"].shape[1]

    # im2col layout glue (plain JAX): per-patch rows in (c, ph, pw) order so a single
    # (K, D) matmul reproduces Conv2d(kernel=stride=P). Cast to bf16 here, fused with the
    # transpose that materializes anyway, so the kernel streams half the HBM bytes.
    patches = (
        x.reshape(B, C, nH, P, nW, P)
        .transpose(0, 2, 4, 1, 3, 5)
        .reshape(B, N, K)
        .astype(jnp.bfloat16)
    )
    cls = params["class_emb"].reshape(1, D)
    pos0 = params["pos_emb"][0:1]     # (1, D)
    posp = params["pos_emb"][1:]      # (N, D)

    TB = _pick_batch_tile(B, N, K, S, D)

    grid_spec = pltpu.PrefetchScalarGridSpec(
        num_scalar_prefetch=0,
        grid=(B // TB,),
        in_specs=[
            pl.BlockSpec((TB, N, K), lambda b: (b, 0, 0)),   # streamed / pipelined patches
            pl.BlockSpec((K, D), lambda b: (0, 0)),           # weight: VMEM-resident
            pl.BlockSpec((1, D), lambda b: (0, 0)),            # bias
            pl.BlockSpec((1, D), lambda b: (0, 0)),            # class token
            pl.BlockSpec((1, D), lambda b: (0, 0)),            # pos row 0
            pl.BlockSpec((N, D), lambda b: (0, 0)),            # pos rows 1..N
        ],
        out_specs=pl.BlockSpec((TB, S, D), lambda b: (b, 0, 0)),
    )

    return pl.pallas_call(
        embedding_kernel,
        out_shape=jax.ShapeDtypeStruct((B, S, D), jnp.float32),
        grid_spec=grid_spec,
        compiler_params=pltpu.CompilerParams(
            dimension_semantics=("parallel",),   # megacore sharding on v7x; no-op on v5e/v6e
        ),
    )(patches, params["patch_w"], params["patch_b"], cls, pos0, posp)


def init_params(key, *, img_size, input_dim, embedding_dim, patch_size):
    D = embedding_dim
    P = patch_size
    C = input_dim
    N = (img_size // P) ** 2
    S = N + 1
    k_w, k_cls, k_pos = jax.random.split(key, 3)
    return {
        # Conv2d weight (D, C, P, P) stored flattened + transposed as (C*P*P, D), bf16 operand.
        "patch_w": (jax.random.normal(k_w, (C * P * P, D), jnp.float32) * 0.02).astype(jnp.bfloat16),
        "patch_b": jnp.zeros((1, D), jnp.float32),
        "class_emb": jax.random.normal(k_cls, (1, 1, D), jnp.float32),   # matches nn.Parameter(1,1,D)
        "pos_emb": jax.random.normal(k_pos, (S, D), jnp.float32),        # matches nn.Parameter(S,D)
    }


if __name__ == "__main__":
    cfg = dict(img_size=32, input_dim=4, embedding_dim=128, patch_size=8)
    key = jax.random.PRNGKey(0)
    kx, kp = jax.random.split(key)
    B = 2
    x = jax.random.normal(
        kx, (B, cfg["input_dim"], cfg["img_size"], cfg["img_size"]), jnp.float32
    )
    params = init_params(kp, **cfg)

    fwd = jax.jit(functools.partial(embedding_block_forward, patch_size=cfg["patch_size"]))
    out = fwd(x, params)
    jax.block_until_ready(out)

    # pure-JAX reference (f32 matmul using the same bf16-rounded weights)
    P = cfg["patch_size"]
    C, Himg, D = cfg["input_dim"], cfg["img_size"], cfg["embedding_dim"]
    nH = Himg // P
    N = nH * nH
    K = C * P * P
    patches_ref = (
        x.reshape(B, C, nH, P, nH, P).transpose(0, 2, 4, 1, 3, 5).reshape(B, N, K)
    )
    ref_proj = patches_ref @ params["patch_w"].astype(jnp.float32) + params["patch_b"]
    ref = (
        jnp.concatenate(
            [jnp.broadcast_to(params["class_emb"], (B, 1, D)), ref_proj], axis=1
        )
        + params["pos_emb"]
    )

    assert out.shape == (B, N + 1, D), out.shape
    assert bool(jnp.all(jnp.isfinite(out)))
    assert bool(jnp.max(jnp.abs(out - ref)) < 2e-2), float(jnp.max(jnp.abs(out - ref)))
    print("KERNEL_OK")
</pallas_src>

<mosaic_0001>
module attributes {stable_mosaic.version = 11 : i64} {
  func.func @embedding_kernel(%arg0: i32, %arg1: memref<2x16x256xbf16, #tpu.memory_space<vmem>>, %arg2: memref<256x128xbf16, #tpu.memory_space<vmem>>, %arg3: memref<1x128xf32, #tpu.memory_space<vmem>>, %arg4: memref<1x128xf32, #tpu.memory_space<vmem>>, %arg5: memref<1x128xf32, #tpu.memory_space<vmem>>, %arg6: memref<16x128xf32, #tpu.memory_space<vmem>>, %arg7: memref<2x17x128xf32, #tpu.memory_space<vmem>>) attributes {dimension_semantics = [#tpu.dimension_semantics<parallel>], iteration_bounds = array<i64: 1>, scalar_prefetch = 0 : i64, scratch_operands = 0 : i64, tpu.core_type = #tpu.core_type<tc>, window_params = [{transform_indices = @transform_0, window_bounds = array<i64: 2, 16, 256>}, {pipeline_mode = #tpu.pipeline_mode<synchronous>, transform_indices = @transform_1, window_bounds = array<i64: 256, 128>}, {pipeline_mode = #tpu.pipeline_mode<synchronous>, transform_indices = @transform_2, window_bounds = array<i64: 1, 128>}, {pipeline_mode = #tpu.pipeline_mode<synchronous>, transform_indices = @transform_3, window_bounds = array<i64: 1, 128>}, {pipeline_mode = #tpu.pipeline_mode<synchronous>, transform_indices = @transform_4, window_bounds = array<i64: 1, 128>}, {pipeline_mode = #tpu.pipeline_mode<synchronous>, transform_indices = @transform_5, window_bounds = array<i64: 16, 128>}, {transform_indices = @transform_6, window_bounds = array<i64: 2, 17, 128>}]} {
    %c0 = arith.constant 0 : index
    %c0_0 = arith.constant 0 : index
    %c0_1 = arith.constant 0 : index
    %0 = vector.load %arg1[%c0, %c0_0, %c0_1] : memref<2x16x256xbf16, #tpu.memory_space<vmem>>, vector<2x16x256xbf16>
    %1 = vector.shape_cast %0 : vector<2x16x256xbf16> to vector<32x256xbf16>
    %c0_2 = arith.constant 0 : index
    %c0_3 = arith.constant 0 : index
    %2 = vector.load %arg2[%c0_2, %c0_3] : memref<256x128xbf16, #tpu.memory_space<vmem>>, vector<256x128xbf16>
    %cst = arith.constant dense<0.000000e+00> : vector<32x128xf32>
    %3 = tpu.matmul %1, %2, %cst {dimension_numbers = #tpu.dot_dimension_numbers<[1], [0], [0], [1], [0, 0, 1, 1], [], []>} : vector<32x256xbf16>, vector<256x128xbf16>, vector<32x128xf32> -> vector<32x128xf32>
    %4 = vector.shape_cast %3 : vector<32x128xf32> to vector<2x16x128xf32>
    %c0_4 = arith.constant 0 : index
    %c0_5 = arith.constant 0 : index
    %5 = vector.load %arg3[%c0_4, %c0_5] : memref<1x128xf32, #tpu.memory_space<vmem>>, vector<1x128xf32>
    %6 = vector.shape_cast %5 : vector<1x128xf32> to vector<1x1x128xf32>
    %7 = vector.broadcast %6 : vector<1x1x128xf32> to vector<2x16x128xf32>
    %8 = arith.addf %4, %7 : vector<2x16x128xf32>
    %c0_6 = arith.constant 0 : index
    %c0_7 = arith.constant 0 : index
    %9 = vector.load %arg6[%c0_6, %c0_7] : memref<16x128xf32, #tpu.memory_space<vmem>>, vector<16x128xf32>
    %10 = vector.shape_cast %9 : vector<16x128xf32> to vector<1x16x128xf32>
    %11 = vector.broadcast %10 : vector<1x16x128xf32> to vector<2x16x128xf32>
    %12 = arith.addf %8, %11 : vector<2x16x128xf32>
    %c0_8 = arith.constant 0 : index
    %c0_9 = arith.constant 0 : index
    %13 = vector.load %arg4[%c0_8, %c0_9] : memref<1x128xf32, #tpu.memory_space<vmem>>, vector<1x128xf32>
    %c0_10 = arith.constant 0 : index
    %c0_11 = arith.constant 0 : index
    %14 = vector.load %arg5[%c0_10, %c0_11] : memref<1x128xf32, #tpu.memory_space<vmem>>, vector<1x128xf32>
    %15 = arith.addf %13, %14 : vector<1x128xf32>
    %16 = vector.shape_cast %15 : vector<1x128xf32> to vector<1x1x128xf32>
    %17 = vector.shape_cast %16 : vector<1x1x128xf32> to vector<1x1x128xf32>
    %18 = vector.broadcast %17 : vector<1x1x128xf32> to vector<2x1x128xf32>
    %c0_12 = arith.constant 0 : index
    %c0_13 = arith.constant 0 : index
    %c0_14 = arith.constant 0 : index
    %19 = vector.load %arg7[%c0_12, %c0_13, %c0_14] : memref<2x17x128xf32, #tpu.memory_space<vmem>>, vector<2x1x128xf32>
    tpu.vector_store %arg7[%c0_12, %c0_13, %c0_14], %18 {strides = array<i32>} : memref<2x17x128xf32, #tpu.memory_space<vmem>>, vector<2x1x128xf32>,
    %c0_15 = arith.constant 0 : index
    %c1 = arith.constant 1 : index
    %c0_16 = arith.constant 0 : index
    %20 = vector.load %arg7[%c0_15, %c1, %c0_16] : memref<2x17x128xf32, #tpu.memory_space<vmem>>, vector<2x16x128xf32>
    tpu.vector_store %arg7[%c0_15, %c1, %c0_16], %12 {strides = array<i32>} : memref<2x17x128xf32, #tpu.memory_space<vmem>>, vector<2x16x128xf32>,
    return
  }
  func.func @transform_0(%arg0: i32) -> (i32, i32, i32) {
    %c0_i32 = arith.constant 0 : i32
    %c0_i32_0 = arith.constant 0 : i32
    %c0_i32_1 = arith.constant 0 : i32
    return %arg0, %c0_i32, %c0_i32_0 : i32, i32, i32
  }
  func.func @transform_1(%arg0: i32) -> (i32, i32) {
    %c0_i32 = arith.constant 0 : i32
    %c0_i32_0 = arith.constant 0 : i32
    %c0_i32_1 = arith.constant 0 : i32
    return %c0_i32, %c0_i32_0 : i32, i32
  }
  func.func @transform_2(%arg0: i32) -> (i32, i32) {
    %c0_i32 = arith.constant 0 : i32
    %c0_i32_0 = arith.constant 0 : i32
    %c0_i32_1 = arith.constant 0 : i32
    return %c0_i32, %c0_i32_0 : i32, i32
  }
  func.func @transform_3(%arg0: i32) -> (i32, i32) {
    %c0_i32 = arith.constant 0 : i32
    %c0_i32_0 = arith.constant 0 : i32
    %c0_i32_1 = arith.constant 0 : i32
    return %c0_i32, %c0_i32_0 : i32, i32
  }
  func.func @transform_4(%arg0: i32) -> (i32, i32) {
    %c0_i32 = arith.constant 0 : i32
    %c0_i32_0 = arith.constant 0 : i32
    %c0_i32_1 = arith.constant 0 : i32
    return %c0_i32, %c0_i32_0 : i32, i32
  }
  func.func @transform_5(%arg0: i32) -> (i32, i32) {
    %c0_i32 = arith.constant 0 : i32
    %c0_i32_0 = arith.constant 0 : i32
    %c0_i32_1 = arith.constant 0 : i32
    return %c0_i32, %c0_i32_0 : i32, i32
  }
  func.func @transform_6(%arg0: i32) -> (i32, i32, i32) {
    %c0_i32 = arith.constant 0 : i32
    %c0_i32_0 = arith.constant 0 : i32
    %c0_i32_1 = arith.constant 0 : i32
    return %arg0, %c0_i32, %c0_i32_0 : i32, i32, i32
  }
}

</mosaic_0001>

<bundles_post_ra>
// kernel: embedding_block_forward.1
= control target key start
LH: loop header
LB: loop body
LE: loop exit
PB: predicated region body
PF: predicated region fallthrough
CT: control target
= control target key end

     0   :  { %s470_s1 = inlined_call_operand.vmem [shape: bf16[256,128], index: 1, kind: input, shape index: {}]   ;;  %s471_s0 = inlined_call_operand.vmem [shape: bf16[2,16,256], index: 0, kind: input, shape index: {}]   ;;  %s472_s3 = inlined_call_operand.vmem [shape: f32[1,128], index: 3, kind: input, shape index: {}]   ;;  %s473_s4 = inlined_call_operand.vmem [shape: f32[1,128], index: 4, kind: input, shape index: {}]   ;;  %s474_s6 = inlined_call_operand.vmem [shape: f32[2,17,128], index: 6, kind: output, shape index: {}]   ;;  %s475_s2 = inlined_call_operand.vmem [shape: f32[1,128], index: 2, kind: input, shape index: {}]   ;;  %s476_s5 = inlined_call_operand.vmem [shape: f32[16,128], index: 5, kind: input, shape index: {}]  }
   0x1   :  { %v320_v0 = vld [vmem:[%s470_s1 + $0x40] sm:$0xff]   ;;  %v322_v2 = vld [vmem:[%s470_s1 + $0x48] sm:$0xff]   ;;  %v324_v4 = vld [vmem:[%s470_s1 + $0x50] sm:$0xff]  }
   0x2   :  { %v321_v1 = vld [vmem:[%s470_s1] sm:$0xff]   ;;  %276 = vmatprep.subr.bf16.mxu0 %v320_v0  ;;  %304 = vmatprep.subr.bf16.mxu1 %v320_v0  ;;  %v323_v3 = vld [vmem:[%s470_s1 + $0x8] sm:$0xff]   ;;  %v325_v5 = vld [vmem:[%s470_s1 + $0x10] sm:$0xff]  }
   0x3   :  { %277 = vmatpush3.bf16.msra.mxu0 %v321_v1  ;;  %312 = vmatpush3.bf16.msra.mxu1 %v321_v1  ;;  %v326_v6 = vld [vmem:[%s470_s1 + $0x58] sm:$0xff]   ;;  %v328_v8 = vld [vmem:[%s470_s1 + $0x60] sm:$0xff]   ;;  %v330_v10 = vld [vmem:[%s470_s1 + $0x68] sm:$0xff]  }
   0x4   :  { %278 = vmatprep.subr.bf16.mxu0 %v322_v2  ;;  %305 = vmatprep.subr.bf16.mxu1 %v322_v2  ;;  %v327_v7 = vld [vmem:[%s470_s1 + $0x18] sm:$0xff]   ;;  %v329_v9 = vld [vmem:[%s470_s1 + $0x20] sm:$0xff]   ;;  %v331_v13 = vld [vmem:[%s470_s1 + $0x28] sm:$0xff]  }
   0x5   :  { %v338_v11 = vld [vmem:[%s471_s0 + $0x4] ss:$8 sps:$4 sm:$0xff]   ;;  %v341_v12 = vld [vmem:[%s471_s0 + $0x14] ss:$8 sps:$4 sm:$0xff]   ;;  %v336_v18 = vld [vmem:[%s471_s0] ss:$8 sps:$4 sm:$0xff]  }
   0x6   :  { %v332_v14 = vld [vmem:[%s470_s1 + $0x70] sm:$0xff]   ;;  %208 = vmatprep.mubr.bf16.mxu0 %v338_v11  ;;  %216 = vmatprep.mubr.bf16.mxu1 %v341_v12  ;;  %v334_v16 = vld [vmem:[%s470_s1 + $0x78] sm:$0xff]   ;;  %v242_v20 = vld [vmem:[%s472_s3] sm:$0x1] }
   0x7   :  { %279 = vmatpush3.bf16.msra.mxu0 %v323_v3  ;;  %313 = vmatpush3.bf16.msra.mxu1 %v323_v3  ;;  %v333_v15 = vld [vmem:[%s470_s1 + $0x30] sm:$0xff]   ;;  %v335_v17 = vld [vmem:[%s470_s1 + $0x38] sm:$0xff]   ;;  %v243_v21 = vld [vmem:[%s473_s4] sm:$0x1] }
   0x8   :  { %280 = vmatprep.subr.bf16.mxu0 %v324_v4  ;;  %306 = vmatprep.subr.bf16.mxu1 %v324_v4  ;;  %v339_v19 = vld [vmem:[%s471_s0 + $0x10] ss:$8 sps:$4 sm:$0xff]   ;;  %v244_v22 = vadd.f32 %v243_v21, %v242_v20  ;;  %v275_v26 = vld [vmem:[%s475_s2] ss:$0 sm:$0xff]  ;;  %v237_v39 = vld [vmem:[%s476_s5 + $0x8] sm:$0xff] }
   0x9   :  { %v236_v32 = vld [vmem:[%s476_s5] sm:$0xff] }
   0xa   :  { %245 = vst [vmem:[%s474_s6] sm:$0x1] %v244_v22  ;;  %246 = vst [vmem:[%s474_s6 + $0x18] sm:$0x1] %v244_v22 }
   0xb   :  { %281 = vmatpush3.bf16.msra.mxu0 %v325_v5  ;;  %314 = vmatpush3.bf16.msra.mxu1 %v325_v5 }
   0xc   :  { %282 = vmatprep.subr.bf16.mxu0 %v326_v6  ;;  %307 = vmatprep.subr.bf16.mxu1 %v326_v6 }
   0xf   :  { %283 = vmatpush3.bf16.msra.mxu0 %v327_v7  ;;  %315 = vmatpush3.bf16.msra.mxu1 %v327_v7 }
  0x10   :  { %284 = vmatprep.subr.bf16.mxu0 %v328_v8  ;;  %308 = vmatprep.subr.bf16.mxu1 %v328_v8 }
  0x13   :  { %285 = vmatpush3.bf16.msra.mxu0 %v329_v9  ;;  %316 = vmatpush3.bf16.msra.mxu1 %v329_v9 }
  0x14   :  { %286 = vmatprep.subr.bf16.mxu0 %v330_v10  ;;  %309 = vmatprep.subr.bf16.mxu1 %v330_v10 }
  0x17   :  { %287 = vmatpush3.bf16.msra.mxu0 %v331_v13  ;;  %317 = vmatpush3.bf16.msra.mxu1 %v331_v13 }
  0x18   :  { %288 = vmatprep.subr.bf16.mxu0 %v332_v14  ;;  %310 = vmatprep.subr.bf16.mxu1 %v332_v14 }
  0x1b   :  { %289 = vmatpush3.bf16.msra.mxu0 %v333_v15  ;;  %318 = vmatpush3.bf16.msra.mxu1 %v333_v15 }
  0x1c   :  { %290 = vmatprep.subr.bf16.mxu0 %v334_v16  ;;  %311 = vmatprep.subr.bf16.mxu1 %v334_v16 }
  0x1f   :  { %291 = vmatpush3.bf16.msra.mxu0 %v335_v17  ;;  %319 = vmatpush3.bf16.msra.mxu1 %v335_v17 }
  0x22   :  { %209 = vmatmul.mubr.bf16.vlgmr.msra.gmra.mrb[0].mxu0 %v336_v18  ;;  %217 = vmatmul.mubr.bf16.vlgmr.msra.gmra.mrb[0].mxu1 %v339_v19 }
  0xf5   :  { %v292_v23 = vpop.f32.mrb[0].mxu0  ;;  %v298_v24 = vpop.f32.mrb[0].mxu1 }
  0xf6   :  { %v293_v25 = vpop.f32.mrb[1].mxu0  ;;  %v299_v27 = vpop.f32.mrb[1].mxu1 }
  0xf7   :  { %v294_v28 = vadd.f32 %v293_v25, %v292_v23  ;;  %v300_v29 = vadd.f32 %v299_v27, %v298_v24  ;;  %v295_v30 = vpop.f32.mrb[2].mxu0  ;;  %v301_v31 = vpop.f32.mrb[2].mxu1 }
  0xf8   :  { %v296_v33 = vpop.f32.mrb[3].mxu0  ;;  %v302_v34 = vpop.f32.mrb[3].mxu1 }
  0xf9   :  { %v232_v35 = vadd.f32 %v294_v28, %v275_v26  ;;  %v234_v36 = vadd.f32 %v300_v29, %v275_v26  ;;  %v297_v37 = vadd.f32 %v296_v33, %v295_v30  ;;  %v303_v38 = vadd.f32 %v302_v34, %v301_v31 }
  0xfb   :  { %v238_v40 = vadd.f32 %v236_v32, %v232_v35  ;;  %v240_v41 = vadd.f32 %v236_v32, %v234_v36  ;;  %v233_v42 = vadd.f32 %v297_v37, %v275_v26  ;;  %v235_v43 = vadd.f32 %v303_v38, %v275_v26 }
  0xfd   :  { %247 = vst [vmem:[%s474_s6 + $0x1] sm:$0xff] %v238_v40  ;;  %249 = vst [vmem:[%s474_s6 + $0x19] sm:$0xff] %v240_v41  ;;  %v239_v44 = vadd.f32 %v237_v39, %v233_v42  ;;  %v241_v45 = vadd.f32 %v237_v39, %v235_v43 }
  0xff   :  { %248 = vst [vmem:[%s474_s6 + $0x9] sm:$0xff] %v239_v44  ;;  %250 = vst [vmem:[%s474_s6 + $0x21] sm:$0xff] %v241_v45 }

</bundles_post_ra>
